<compile_context>
chip_gen: v5e
topology: v5e:2x2
jax: 0.10.0
libtpu: 0.0.40
codegen_flags: <defaults>
</compile_context>

<pallas_src>
import jax
import jax.numpy as jnp
from jax.experimental import pallas as pl
from jax.experimental.pallas import tpu as pltpu

LAYER_SIZES = [1] + [128] * 4 + [1]


def _round_up(x, m):
    return (x + m - 1) // m * m


def _fnn_kernel(x_ref,
                w1_ref, b1_ref,
                w2_ref, b2_ref,
                w3_ref, b3_ref,
                w4_ref, b4_ref,
                w5_ref, b5_ref,
                o_ref):
    # Layer 1: in_features == 1 -> outer product on the VPU (broadcast multiply).
    h = jnp.maximum(x_ref[...] * w1_ref[...] + b1_ref[...], 0.0)    # (block, 128) f32

    # Hidden layers 2-4: MXU matmuls (operands possibly bf16, f32 accumulation),
    # bias + ReLU epilogue in f32 on the VPU.
    for w_ref, b_ref in ((w2_ref, b2_ref), (w3_ref, b3_ref), (w4_ref, b4_ref)):
        acc = jnp.dot(h.astype(w_ref.dtype), w_ref[...],
                      preferred_element_type=jnp.float32)
        h = jnp.maximum(acc + b_ref[...], 0.0)

    # Layer 5: out_features == 1.  Contract the hidden dim on the MXU with a
    # transposed-RHS dot_general so the result is lane-dense: (1, block).
    out = jax.lax.dot_general(w5_ref[...], h,
                              dimension_numbers=(((1,), (1,)), ((), ())),
                              preferred_element_type=jnp.float32)   # (1, block)
    o_ref[...] = (out + b5_ref[...]).astype(o_ref.dtype)


def fnn_forward(x, params, *, tm=2048, compute_dtype=jnp.bfloat16):
    """Forward pass of the 5-layer MLP.

    x: (N, 1) float32.
    params: list of (W, b); W: (in_features, out_features) -- i.e. the transpose
            of torch.nn.Linear.weight, identical math to the PyTorch module.
    tm: rows per grid step (rounded to a multiple of 128); 2048-4096 keeps the
        MXU full and amortizes per-step overhead.  The batch is padded to a
        multiple of the tile and the padding sliced off afterwards.
    compute_dtype: dtype of the hidden-layer matmul operands; accumulation is
        always f32.  Use jnp.float32 for tight numerical checks.
    """
    n, d_in = x.shape
    assert d_in == LAYER_SIZES[0]
    assert len(params) == len(LAYER_SIZES) - 1

    (w1, b1), (w2, b2), (w3, b3), (w4, b4), (w5, b5) = params

    # Batch tile: multiple of 128 so the lane-dense (1, block) output tile is
    # legal.  Pad N up to a multiple of the tile; slice the padding off later.
    tm = max(128, _round_up(tm, 128))
    n128 = _round_up(n, 128)
    block = min(tm, n128)
    # v7x megacore: "parallel" shards the grid axis over 2 TensorCores, so avoid
    # a single-step grid whenever the padded batch can be split in two.
    if block == n128 and block >= 256:
        block = _round_up(block // 2, 128)
    n_pad = _round_up(n, block)
    if n_pad != n:
        x = jnp.pad(x, ((0, n_pad - n), (0, 0)))
    grid = (n_pad // block,)

    # Layers 1 and 5 run in f32; only the 128x128 hidden weights get the
    # (optional) low-precision treatment for the MXU.
    w1_row = w1.reshape(1, LAYER_SIZES[1]).astype(jnp.float32)      # (1, 128)
    w5_row = w5.reshape(1, LAYER_SIZES[4]).astype(jnp.float32)      # (128,1) -> (1,128)
    w2c = w2.astype(compute_dtype)
    w3c = w3.astype(compute_dtype)
    w4c = w4.astype(compute_dtype)
    b1r = b1.reshape(1, -1).astype(jnp.float32)
    b2r = b2.reshape(1, -1).astype(jnp.float32)
    b3r = b3.reshape(1, -1).astype(jnp.float32)
    b4r = b4.reshape(1, -1).astype(jnp.float32)
    b5r = b5.reshape(1, 1).astype(jnp.float32)

    args = (x, w1_row, b1r, w2c, b2r, w3c, b3r, w4c, b4r, w5_row, b5r)

    def _const(arr):
        # Whole array, constant index_map -> resident in VMEM (~100-200 KiB total).
        return pl.BlockSpec(arr.shape, lambda i: (0, 0))

    in_specs = [pl.BlockSpec((block, d_in), lambda i: (i, 0))]       # x: tiled rows
    in_specs += [_const(a) for a in args[1:]]                        # weights/biases

    out = pl.pallas_call(
        _fnn_kernel,
        out_shape=jax.ShapeDtypeStruct((1, n_pad), x.dtype),         # lane-dense output
        grid_spec=pl.GridSpec(
            grid=grid,
            in_specs=in_specs,
            out_specs=pl.BlockSpec((1, block), lambda i: (0, i)),
        ),
        compiler_params=pltpu.CompilerParams(
            dimension_semantics=("parallel",)),                      # megacore on v7x
    )(*args)

    return out[0, :n].reshape(n, 1)


def init_params(key, layer_sizes):
    """Deterministic init mimicking PyTorch Linear's U(-1/sqrt(fan_in), ...)."""
    params = []
    for i in range(1, len(layer_sizes)):
        fan_in, fan_out = layer_sizes[i - 1], layer_sizes[i]
        key, kw, kb = jax.random.split(key, 3)
        bound = 1.0 / jnp.sqrt(fan_in)
        w = jax.random.uniform(kw, (fan_in, fan_out), jnp.float32, -bound, bound)
        b = jax.random.uniform(kb, (fan_out,), jnp.float32, -bound, bound)
        params.append((w, b))
    return params


def fnn_reference(x, params):
    """Pure-JAX f32 reference for correctness checking."""
    h = x
    for (w, b) in params[:-1]:
        h = jnp.maximum(h @ w + b, 0.0)
    w, b = params[-1]
    return h @ w + b


if __name__ == "__main__":
    key = jax.random.PRNGKey(0)
    key, kx = jax.random.split(key)

    batch = 300                                 # not a multiple of 128 -> padding path
    x = jax.random.normal(kx, (batch, 1), jnp.float32)
    params = init_params(key, LAYER_SIZES)

    ref = fnn_reference(x, params)

    # f32 path with a small tile: exercises a 3-step grid + padding, tight check.
    out_f32 = jax.block_until_ready(
        fnn_forward(x, params, tm=128, compute_dtype=jnp.float32))
    assert out_f32.shape == (batch, 1), out_f32.shape
    err_f32 = float(jnp.max(jnp.abs(out_f32 - ref)))
    assert err_f32 < 1e-4, f"f32 max abs err = {err_f32}"

    # Default optimized path: large tile (split into 2 grid steps for megacore),
    # bf16 MXU operands with f32 accumulation -> looser tolerance.
    out = jax.block_until_ready(fnn_forward(x, params))
    assert out.shape == (batch, 1), out.shape
    err_bf16 = float(jnp.max(jnp.abs(out - ref)))
    assert err_bf16 < 5e-2, f"bf16 max abs err = {err_bf16}"

    # Tiny batch sanity check: single 128-row step with heavy padding.
    xs = x[:20]
    out_small = jax.block_until_ready(
        fnn_forward(xs, params, compute_dtype=jnp.float32))
    assert out_small.shape == (20, 1), out_small.shape
    assert jnp.allclose(out_small, ref[:20], atol=1e-4), (
        f"small-batch max abs err = {float(jnp.max(jnp.abs(out_small - ref[:20])))}")

    print("KERNEL_OK")
</pallas_src>

<mosaic_0001>
module attributes {stable_mosaic.version = 11 : i64} {
  func.func @_fnn_kernel(%arg0: i32, %arg1: memref<128x1xf32, #tpu.memory_space<vmem>>, %arg2: memref<1x128xf32, #tpu.memory_space<vmem>>, %arg3: memref<1x128xf32, #tpu.memory_space<vmem>>, %arg4: memref<128x128xf32, #tpu.memory_space<vmem>>, %arg5: memref<1x128xf32, #tpu.memory_space<vmem>>, %arg6: memref<128x128xf32, #tpu.memory_space<vmem>>, %arg7: memref<1x128xf32, #tpu.memory_space<vmem>>, %arg8: memref<128x128xf32, #tpu.memory_space<vmem>>, %arg9: memref<1x128xf32, #tpu.memory_space<vmem>>, %arg10: memref<1x128xf32, #tpu.memory_space<vmem>>, %arg11: memref<1x1xf32, #tpu.memory_space<vmem>>, %arg12: memref<1x128xf32, #tpu.memory_space<vmem>>) attributes {dimension_semantics = [#tpu.dimension_semantics<parallel>], iteration_bounds = array<i64: 3>, scalar_prefetch = 0 : i64, scratch_operands = 0 : i64, tpu.core_type = #tpu.core_type<tc>, window_params = [{transform_indices = @transform_0, window_bounds = array<i64: 128, 1>}, {pipeline_mode = #tpu.pipeline_mode<synchronous>, transform_indices = @transform_1, window_bounds = array<i64: 1, 128>}, {pipeline_mode = #tpu.pipeline_mode<synchronous>, transform_indices = @transform_2, window_bounds = array<i64: 1, 128>}, {pipeline_mode = #tpu.pipeline_mode<synchronous>, transform_indices = @transform_3, window_bounds = array<i64: 128, 128>}, {pipeline_mode = #tpu.pipeline_mode<synchronous>, transform_indices = @transform_4, window_bounds = array<i64: 1, 128>}, {pipeline_mode = #tpu.pipeline_mode<synchronous>, transform_indices = @transform_5, window_bounds = array<i64: 128, 128>}, {pipeline_mode = #tpu.pipeline_mode<synchronous>, transform_indices = @transform_6, window_bounds = array<i64: 1, 128>}, {pipeline_mode = #tpu.pipeline_mode<synchronous>, transform_indices = @transform_7, window_bounds = array<i64: 128, 128>}, {pipeline_mode = #tpu.pipeline_mode<synchronous>, transform_indices = @transform_8, window_bounds = array<i64: 1, 128>}, {pipeline_mode = #tpu.pipeline_mode<synchronous>, transform_indices = @transform_9, window_bounds = array<i64: 1, 128>}, {pipeline_mode = #tpu.pipeline_mode<synchronous>, transform_indices = @transform_10, window_bounds = array<i64: 1, 1>}, {transform_indices = @transform_11, window_bounds = array<i64: 1, 128>}]} {
    %c0 = arith.constant 0 : index
    %c0_0 = arith.constant 0 : index
    %0 = vector.load %arg1[%c0, %c0_0] : memref<128x1xf32, #tpu.memory_space<vmem>>, vector<128x1xf32>
    %c0_1 = arith.constant 0 : index
    %c0_2 = arith.constant 0 : index
    %1 = vector.load %arg2[%c0_1, %c0_2] : memref<1x128xf32, #tpu.memory_space<vmem>>, vector<1x128xf32>
    %2 = vector.broadcast %0 : vector<128x1xf32> to vector<128x128xf32>
    %3 = vector.broadcast %1 : vector<1x128xf32> to vector<128x128xf32>
    %4 = arith.mulf %2, %3 : vector<128x128xf32>
    %c0_3 = arith.constant 0 : index
    %c0_4 = arith.constant 0 : index
    %5 = vector.load %arg3[%c0_3, %c0_4] : memref<1x128xf32, #tpu.memory_space<vmem>>, vector<1x128xf32>
    %6 = vector.broadcast %5 : vector<1x128xf32> to vector<128x128xf32>
    %7 = arith.addf %4, %6 : vector<128x128xf32>
    %cst = arith.constant 0.000000e+00 : f32
    %8 = vector.broadcast %cst : f32 to vector<128x128xf32>
    %9 = arith.maximumf %7, %8 : vector<128x128xf32>
    %c0_5 = arith.constant 0 : index
    %c0_6 = arith.constant 0 : index
    %10 = vector.load %arg4[%c0_5, %c0_6] : memref<128x128xf32, #tpu.memory_space<vmem>>, vector<128x128xf32>
    %cst_7 = arith.constant dense<0.000000e+00> : vector<128x128xf32>
    %11 = tpu.matmul %9, %10, %cst_7 {dimension_numbers = #tpu.dot_dimension_numbers<[1], [0], [0], [1], [0, 0, 1, 1], [], []>} : vector<128x128xf32>, vector<128x128xf32>, vector<128x128xf32> -> vector<128x128xf32>
    %c0_8 = arith.constant 0 : index
    %c0_9 = arith.constant 0 : index
    %12 = vector.load %arg5[%c0_8, %c0_9] : memref<1x128xf32, #tpu.memory_space<vmem>>, vector<1x128xf32>
    %13 = vector.broadcast %12 : vector<1x128xf32> to vector<128x128xf32>
    %14 = arith.addf %11, %13 : vector<128x128xf32>
    %cst_10 = arith.constant 0.000000e+00 : f32
    %15 = vector.broadcast %cst_10 : f32 to vector<128x128xf32>
    %16 = arith.maximumf %14, %15 : vector<128x128xf32>
    %c0_11 = arith.constant 0 : index
    %c0_12 = arith.constant 0 : index
    %17 = vector.load %arg6[%c0_11, %c0_12] : memref<128x128xf32, #tpu.memory_space<vmem>>, vector<128x128xf32>
    %cst_13 = arith.constant dense<0.000000e+00> : vector<128x128xf32>
    %18 = tpu.matmul %16, %17, %cst_13 {dimension_numbers = #tpu.dot_dimension_numbers<[1], [0], [0], [1], [0, 0, 1, 1], [], []>} : vector<128x128xf32>, vector<128x128xf32>, vector<128x128xf32> -> vector<128x128xf32>
    %c0_14 = arith.constant 0 : index
    %c0_15 = arith.constant 0 : index
    %19 = vector.load %arg7[%c0_14, %c0_15] : memref<1x128xf32, #tpu.memory_space<vmem>>, vector<1x128xf32>
    %20 = vector.broadcast %19 : vector<1x128xf32> to vector<128x128xf32>
    %21 = arith.addf %18, %20 : vector<128x128xf32>
    %cst_16 = arith.constant 0.000000e+00 : f32
    %22 = vector.broadcast %cst_16 : f32 to vector<128x128xf32>
    %23 = arith.maximumf %21, %22 : vector<128x128xf32>
    %c0_17 = arith.constant 0 : index
    %c0_18 = arith.constant 0 : index
    %24 = vector.load %arg8[%c0_17, %c0_18] : memref<128x128xf32, #tpu.memory_space<vmem>>, vector<128x128xf32>
    %cst_19 = arith.constant dense<0.000000e+00> : vector<128x128xf32>
    %25 = tpu.matmul %23, %24, %cst_19 {dimension_numbers = #tpu.dot_dimension_numbers<[1], [0], [0], [1], [0, 0, 1, 1], [], []>} : vector<128x128xf32>, vector<128x128xf32>, vector<128x128xf32> -> vector<128x128xf32>
    %c0_20 = arith.constant 0 : index
    %c0_21 = arith.constant 0 : index
    %26 = vector.load %arg9[%c0_20, %c0_21] : memref<1x128xf32, #tpu.memory_space<vmem>>, vector<1x128xf32>
    %27 = vector.broadcast %26 : vector<1x128xf32> to vector<128x128xf32>
    %28 = arith.addf %25, %27 : vector<128x128xf32>
    %cst_22 = arith.constant 0.000000e+00 : f32
    %29 = vector.broadcast %cst_22 : f32 to vector<128x128xf32>
    %30 = arith.maximumf %28, %29 : vector<128x128xf32>
    %c0_23 = arith.constant 0 : index
    %c0_24 = arith.constant 0 : index
    %31 = vector.load %arg10[%c0_23, %c0_24] : memref<1x128xf32, #tpu.memory_space<vmem>>, vector<1x128xf32>
    %cst_25 = arith.constant dense<0.000000e+00> : vector<1x128xf32>
    %32 = tpu.matmul %31, %30, %cst_25 {dimension_numbers = #tpu.dot_dimension_numbers<[1], [1], [0], [0], [0, 0, 1, 0], [], []>} : vector<1x128xf32>, vector<128x128xf32>, vector<1x128xf32> -> vector<1x128xf32>
    %c0_26 = arith.constant 0 : index
    %c0_27 = arith.constant 0 : index
    %33 = vector.load %arg11[%c0_26, %c0_27] : memref<1x1xf32, #tpu.memory_space<vmem>>, vector<1x1xf32>
    %34 = vector.broadcast %33 : vector<1x1xf32> to vector<1x128xf32>
    %35 = arith.addf %32, %34 : vector<1x128xf32>
    %c0_28 = arith.constant 0 : index
    %c0_29 = arith.constant 0 : index
    %36 = vector.load %arg12[%c0_28, %c0_29] : memref<1x128xf32, #tpu.memory_space<vmem>>, vector<1x128xf32>
    tpu.vector_store %arg12[%c0_28, %c0_29], %35 {strides = array<i32>} : memref<1x128xf32, #tpu.memory_space<vmem>>, vector<1x128xf32>,
    return
  }
  func.func @transform_0(%arg0: i32) -> (i32, i32) {
    %c0_i32 = arith.constant 0 : i32
    %c0_i32_0 = arith.constant 0 : i32
    return %arg0, %c0_i32 : i32, i32
  }
  func.func @transform_1(%arg0: i32) -> (i32, i32) {
    %c0_i32 = arith.constant 0 : i32
    %c0_i32_0 = arith.constant 0 : i32
    %c0_i32_1 = arith.constant 0 : i32
    return %c0_i32, %c0_i32_0 : i32, i32
  }
  func.func @transform_2(%arg0: i32) -> (i32, i32) {
    %c0_i32 = arith.constant 0 : i32
    %c0_i32_0 = arith.constant 0 : i32
    %c0_i32_1 = arith.constant 0 : i32
    return %c0_i32, %c0_i32_0 : i32, i32
  }
  func.func @transform_3(%arg0: i32) -> (i32, i32) {
    %c0_i32 = arith.constant 0 : i32
    %c0_i32_0 = arith.constant 0 : i32
    %c0_i32_1 = arith.constant 0 : i32
    return %c0_i32, %c0_i32_0 : i32, i32
  }
  func.func @transform_4(%arg0: i32) -> (i32, i32) {
    %c0_i32 = arith.constant 0 : i32
    %c0_i32_0 = arith.constant 0 : i32
    %c0_i32_1 = arith.constant 0 : i32
    return %c0_i32, %c0_i32_0 : i32, i32
  }
  func.func @transform_5(%arg0: i32) -> (i32, i32) {
    %c0_i32 = arith.constant 0 : i32
    %c0_i32_0 = arith.constant 0 : i32
    %c0_i32_1 = arith.constant 0 : i32
    return %c0_i32, %c0_i32_0 : i32, i32
  }
  func.func @transform_6(%arg0: i32) -> (i32, i32) {
    %c0_i32 = arith.constant 0 : i32
    %c0_i32_0 = arith.constant 0 : i32
    %c0_i32_1 = arith.constant 0 : i32
    return %c0_i32, %c0_i32_0 : i32, i32
  }
  func.func @transform_7(%arg0: i32) -> (i32, i32) {
    %c0_i32 = arith.constant 0 : i32
    %c0_i32_0 = arith.constant 0 : i32
    %c0_i32_1 = arith.constant 0 : i32
    return %c0_i32, %c0_i32_0 : i32, i32
  }
  func.func @transform_8(%arg0: i32) -> (i32, i32) {
    %c0_i32 = arith.constant 0 : i32
    %c0_i32_0 = arith.constant 0 : i32
    %c0_i32_1 = arith.constant 0 : i32
    return %c0_i32, %c0_i32_0 : i32, i32
  }
  func.func @transform_9(%arg0: i32) -> (i32, i32) {
    %c0_i32 = arith.constant 0 : i32
    %c0_i32_0 = arith.constant 0 : i32
    %c0_i32_1 = arith.constant 0 : i32
    return %c0_i32, %c0_i32_0 : i32, i32
  }
  func.func @transform_10(%arg0: i32) -> (i32, i32) {
    %c0_i32 = arith.constant 0 : i32
    %c0_i32_0 = arith.constant 0 : i32
    %c0_i32_1 = arith.constant 0 : i32
    return %c0_i32, %c0_i32_0 : i32, i32
  }
  func.func @transform_11(%arg0: i32) -> (i32, i32) {
    %c0_i32 = arith.constant 0 : i32
    %c0_i32_0 = arith.constant 0 : i32
    return %c0_i32, %arg0 : i32, i32
  }
}

</mosaic_0001>

<bundles_post_ra>
// kernel: tpu_custom_call.1
= control target key start
LH: loop header
LB: loop body
LE: loop exit
PB: predicated region body
PF: predicated region fallthrough
CT: control target
= control target key end

     0   :  { %s1412_s0 = inlined_call_operand.vmem [shape: f32[384,1], index: 0, kind: input, shape index: {}]   ;;  %s1413_s1 = inlined_call_operand.vmem [shape: f32[1,128], index: 1, kind: input, shape index: {}]   ;;  %s1414_s2 = inlined_call_operand.vmem [shape: f32[1,128], index: 2, kind: input, shape index: {}]   ;;  %s1415_s3 = inlined_call_operand.vmem [shape: f32[128,128], index: 3, kind: input, shape index: {}]   ;;  %s1416_s4 = inlined_call_operand.vmem [shape: f32[1,128], index: 4, kind: input, shape index: {}]   ;;  %s1417_s5 = inlined_call_operand.vmem [shape: f32[128,128], index: 5, kind: input, shape index: {}]   ;;  %s1418_s6 = inlined_call_operand.vmem [shape: f32[1,128], index: 6, kind: input, shape index: {}]   ;;  %s1419_s7 = inlined_call_operand.vmem [shape: f32[128,128], index: 7, kind: input, shape index: {}]   ;;  %s1420_s8 = inlined_call_operand.vmem [shape: f32[1,128], index: 8, kind: input, shape index: {}]   ;;  %s1421_s9 = inlined_call_operand.vmem [shape: f32[1,128], index: 9, kind: input, shape index: {}]   ;;  %s1422_s10 = inlined_call_operand.<no memory space> [shape: f32[1,1], index: 10, kind: input, shape index: {}]   ;;  %s1423_s11 = inlined_call_operand.hbm [shape: f32[1,384], index: 11, kind: output, shape index: {}]  }
   0x1   :  { %v16_v0 = vstv %s1422_s10 }
   0x2   :  { %17 = vst [vmem:[#allocation2] sm:$0x1] %v16_v0 }
   0x3   :  { %18 = vsyncpa [#allocation4], 0 }
   0x4   :  { %20 = vsyncpa [#allocation4 + $0x1], 0  ;;  %s1124_s19 = smov 0   ;;  %s1126_s20 = smov 0  }
   0x5   :  { %s1128_s21 = smov 0   ;;  %s1130_s22 = smov 0  }
   0x6 LB: > { %s1145_s10 = sadd.s32 4294967295, %s1058_s22   ;;  %s940_s23 = sadd.s32 4294967294, %s1058_s22   ;;  %s1058_s22 = sphi %s1130_s22, %s1429_s22   ;;  %s1054_s21 = sphi %s1128_s21, %s1428_s21   ;;  %s1050_s20 = sphi %s1126_s20, %s1427_s20   ;;  %s1046_s19 = sphi %s1124_s19, %s1426_s19  }
   0x7   : > { %s1149_s24 = sadd.s32 1, %s1058_s22   ;;  %s269_s25 = sadd.s32 1, %s1054_s21 }
   0x8   : > { %s266_s26 = ssub.s32 %s1058_s22, %s1149_s24  ;;  %p279_p0 = scmp.ne.s32.totalorder %s1054_s21, %s1050_s20 }
   0x9   : > { %p267_p1 = scmp.eq.s32.totalorder %s266_s26, 0  ;;  %p280_p2 = scmp.eq.s32.totalorder %s1145_s10, 2 }
   0xa   : > { %p285_p3 = scmp.ne.s32.totalorder %s1050_s20, %s1046_s19  ;;  %p286_p4 = scmp.eq.s32.totalorder %s940_s23, 2 }
   0xb   : > { %s1160_s27 = scalar_select %p267_p1, %s1054_s21, %s269_s25  }
   0xc   : > { %p1162_p5 = por %p280_p2, %p279_p0  ;;  %p1166_p6 = por %p286_p4, %p285_p3 }
   0xd   : > { %p943_p7 = scmp.ge.s32.totalorder %s1058_s22, 1  ;;  %p343_p8 = scmp.lt.s32.totalorder %s1058_s22, 4 }
   0xf   : > { %p344_p9 = pnand %p943_p7, %p343_p8 }
  0x10   : > { %s944_s30 = sshll.u32 (!%p344_p9), %s1145_s10, 4  ;;  %s380_s17 = sand.u32 (!%p344_p9), 1, %s1050_s20  }
  0x11   : > { %347 = sbr.rel (%p344_p9) target bundleno = 863 (0x35f), region = 64  ;;  %p383_p10 = scmp.lt.s32.totalorder (!%p344_p9), %s944_s30, 47 }
  0x12   : > { %s881_s23 = scalar_lea.hbm (!%p344_p9), %s1423_s11, %s1145_s10  ;;  %s381_s25 = scalar_lea.vmem (!%p344_p9), [#allocation3], %s380_s17 }
  0x13   : > { %s883_s26 = sshll.u32 (!%p344_p9), %s381_s25, 4  ;;  %s884_s26 = int_to_ptr.vmem [resolvable:$true] %s883_s26 }
  0x16   : > { %v1060_v1 = vmov 0   ;;  %s1431_s30 = smov (!%p383_p10, %s944_s30), 47  ;;  %v555_v8 = vld [vmem:[%s1415_s3 + $0x78] sm:$0xff]  ;;  %v554_v9 = vld [vmem:[%s1415_s3 + $0x70] sm:$0xff]  ;;  %v553_v10 = vld [vmem:[%s1415_s3 + $0x68] sm:$0xff] }
  0x17   : > { %989 = vset.pattern.permute.xlu1 %v1060_v1  ;;  %988 = vset.pattern.permute.xlu0 %v1060_v1  ;;  %s945_s12 = sshll.u32 %s1431_s30, 3  ;;  %v552_v11 = vld [vmem:[%s1415_s3 + $0x60] sm:$0xff]  ;;  %v551_v14 = vld [vmem:[%s1415_s3 + $0x58] sm:$0xff]  ;;  %v550_v16 = vld [vmem:[%s1415_s3 + $0x50] sm:$0xff]  ;;  %s885_s30 = sshll.u32 %s881_s23, 4  ;;  %s886_s30 = int_to_ptr.hbm [resolvable:$true] %s885_s30 }
  0x18   : > { %990 = vset.pattern.permute.xlu2 %v1060_v1  ;;  %s1176_s15 = scalar_lea.vmem %s1412_s0, %s945_s12  ;;  %560 = vmatpush.msra.mxu0 %v555_v8  ;;  %v549_v17 = vld [vmem:[%s1415_s3 + $0x48] sm:$0xff]  ;;  %v548_v18 = vld [vmem:[%s1415_s3 + $0x40] sm:$0xff]  ;;  %v547_v21 = vld [vmem:[%s1415_s3 + $0x38] sm:$0xff]  ;;  %s873_s12 = scalar_lea.sflag [#allocation4], %s380_s17 }
  0x19   : > { %v390_v2 = vld [vmem:[%s1176_s15 + $0x10] sm:$0xff]  ;;  %v388_v3 = vld [vmem:[%s1176_s15] sm:$0xff]  ;;  %v391_v5 = vld [vmem:[%s1176_s15 + $0x18] sm:$0xff]  ;;  %s1010_s13 = sshra.s32 %s886_s30, 4  ;;  %s1011_s13 = int_to_ptr.hbm [resolvable:$true] %s1010_s13 }
  0x1a   : > { %417 = vperm.xlu1 %989, %v390_v2   ;;  %407 = vperm.xlu0 %988, %v388_v3   ;;  %v392_v4 = vld [vmem:[%s1176_s15 + $0x20] sm:$0xff]  ;;  %v389_v6 = vld [vmem:[%s1176_s15 + $0x8] sm:$0xff]  ;;  %v395_v12 = vld [vmem:[%s1176_s15 + $0x38] sm:$0xff]  ;;  %s1012_s14 = scalar_lea.hbm %s1011_s13, 1  ;;  %p1017_p0 = scmp.lt.s32.totalorder %s1011_s13, %s1423_s11 }
  0x1b   : > { %427 = vperm.xlu2 %990, %v392_v4   ;;  %v393_v7 = vld [vmem:[%s1176_s15 + $0x28] sm:$0xff]  ;;  %561 = vmatpush.msra.mxu0 %v554_v9  ;;  %v394_v13 = vld [vmem:[%s1176_s15 + $0x30] sm:$0xff]  ;;  %v396_v15 = vld [vmem:[%s1176_s15 + $0x40] sm:$0xff]  ;;  %p1013_p11 = scmp.ne.s32.totalorder %s1011_s13, %s1012_s14 }
  0x1c   : > { %v398_v19 = vld [vmem:[%s1176_s15 + $0x50] sm:$0xff]  ;;  %v397_v20 = vld [vmem:[%s1176_s15 + $0x48] sm:$0xff]  ;;  %v399_v22 = vld [vmem:[%s1176_s15 + $0x58] sm:$0xff] }
  0x1d   : > { %562 = vmatpush.msra.mxu0 %v553_v10  ;;  %v546_v23 = vld [vmem:[%s1415_s3 + $0x30] sm:$0xff]  ;;  %v545_v24 = vld [vmem:[%s1415_s3 + $0x28] sm:$0xff]  ;;  %v544_v25 = vld [vmem:[%s1415_s3 + $0x20] sm:$0xff]  ;;  %p1014_p12 = pnand %p1013_p11, %p1162_p5 }
  0x1e   : > { %v401_v26 = vld [vmem:[%s1176_s15 + $0x68] sm:$0xff]  ;;  %v400_v27 = vld [vmem:[%s1176_s15 + $0x60] sm:$0xff]  ;;  %v543_v28 = vld [vmem:[%s1415_s3 + $0x18] sm:$0xff] }
  0x1f   : > { %563 = vmatpush.msra.mxu0 %v552_v11  ;;  %v402_v29 = vld [vmem:[%s1176_s15 + $0x70] sm:$0xff]  ;;  %v844_v30 = vld [vmem:[#allocation2] sm:$0x1]  ;;  %v403_v31 = vld [vmem:[%s1176_s15 + $0x78] sm:$0xff]  ;;  %p1015_p13 = pneg %p1014_p12  ;;  %s1016_s15 = scalar_lea.hbm %s1423_s11, 3 }
  0x20   : > { %v542_v32 = vld [vmem:[%s1415_s3 + $0x10] sm:$0xff]  ;;  %v541_v33 = vld [vmem:[%s1415_s3 + $0x8] sm:$0xff]  ;;  %v540_v34 = vld [vmem:[%s1415_s3] sm:$0xff]  ;;  %p1018_p1 = scmp.lt.s32.totalorder %s1016_s15, %s1012_s14 }
  0x21   : > { %564 = vmatpush.msra.mxu0 %v551_v14  ;;  %v991_v38 = vld [vmem:[%s1413_s1] ss:$0 sm:$0xff] }
  0x22   : > { %422 = vperm.xlu1 %989, %v391_v5   ;;  %412 = vperm.xlu0 %988, %v389_v6   ;;  %v992_v39 = vld [vmem:[%s1414_s2] ss:$0 sm:$0xff]  ;;  %p1019_p2 = por %p1018_p1, %p1017_p0 }
  0x23   : > { %432 = vperm.xlu2 %990, %v393_v7   ;;  %565 = vmatpush.msra.mxu0 %v550_v16 }
  0x24   : > { %p1020_p3 = pnand %p1019_p2, %p1015_p13 }
  0x25   : > { %566 = vmatpush.msra.mxu0 %v549_v17 }
  0x27   : > { %567 = vmatpush.msra.mxu0 %v548_v18 }
  0x29   : > { %568 = vmatpush.msra.mxu0 %v547_v21 }
  0x2a   : > { %442 = vperm.xlu1 %989, %v395_v12   ;;  %437 = vperm.xlu0 %988, %v394_v13  }
  0x2b   : > { %447 = vperm.xlu2 %990, %v396_v15   ;;  %569 = vmatpush.msra.mxu0 %v546_v23 }
  0x2d   : > { %570 = vmatpush.msra.mxu0 %v545_v24 }
  0x2f   : > { %571 = vmatpush.msra.mxu0 %v544_v25 }
  0x31   : > { %572 = vmatpush.msra.mxu0 %v543_v28 }
  0x32   : > { %457 = vperm.xlu1 %989, %v398_v19   ;;  %452 = vperm.xlu0 %988, %v397_v20  }
  0x33   : > { %462 = vperm.xlu2 %990, %v399_v22   ;;  %573 = vmatpush.msra.mxu0 %v542_v32  ;;  %v654_v32 = vld [vmem:[%s1417_s5 + $0x68] sm:$0xff] }
  0x35   : > { %574 = vmatpush.msra.mxu0 %v541_v33 }
  0x37   : > { %575 = vmatpush.msra.mxu0 %v540_v34  ;;  %v653_v34 = vld [vmem:[%s1417_s5 + $0x60] sm:$0xff] }
  0x3a   : > { %472 = vperm.xlu1 %989, %v401_v26   ;;  %467 = vperm.xlu0 %988, %v400_v27  }
  0x3b   : > { %477 = vperm.xlu2 %990, %v402_v29  }
  0x42   : > { %847 = vperm.xlu1 %989, %v844_v30   ;;  %482 = vperm.xlu0 %988, %v403_v31   ;;  %v656_v30 = vld [vmem:[%s1417_s5 + $0x78] sm:$0xff]  ;;  %v655_v31 = vld [vmem:[%s1417_s5 + $0x70] sm:$0xff] }
  0x43   : > { %661 = vmatpush.msra.mxu1 %v656_v30  ;;  %v750_v30 = vld [vmem:[%s1419_s7 + $0x40] sm:$0xff] }
  0x45   : > { %662 = vmatpush.msra.mxu1 %v655_v31  ;;  %v749_v31 = vld [vmem:[%s1419_s7 + $0x38] sm:$0xff] }
  0x47   : > { %663 = vmatpush.msra.mxu1 %v654_v32 }
  0x49   : > { %664 = vmatpush.msra.mxu1 %v653_v34  ;;  %v748_v34 = vld [vmem:[%s1419_s7 + $0x30] sm:$0xff] }
  0x75   : > { %v428_v35 = vpop.permute.xlu2 %427 }
  0x76   : > { %v492_v5 = vmul.f32 %v991_v38, %v428_v35  ;;  %v652_v35 = vld [vmem:[%s1417_s5 + $0x58] sm:$0xff] }
  0x77   : > { %665 = vmatpush.msra.mxu1 %v652_v35 }
  0x78   : > { %v512_v9 = vadd.f32 %v992_v39, %v492_v5 }
  0x7a   : > { %v528_v14 = vmax.f32 %v512_v9, 0.0 }
  0x7d   : > { %v433_v36 = vpop.permute.xlu2 %432 }
  0x7e   : > { %v493_v17 = vmul.f32 %v991_v38, %v433_v36  ;;  %v651_v36 = vld [vmem:[%s1417_s5 + $0x50] sm:$0xff] }
  0x7f   : > { %666 = vmatpush.msra.mxu1 %v651_v36  ;;  %v747_v36 = vld [vmem:[%s1419_s7 + $0x28] sm:$0xff] }
  0x80   : > { %v513_v20 = vadd.f32 %v992_v39, %v493_v17  ;;  %v757_v17 = vld [vmem:[%s1419_s7 + $0x78] sm:$0xff] }
  0x81   : > { %762 = vmatpush.msra.mxu2 %v757_v17 }
  0x82   : > { %v529_v23 = vmax.f32 %v513_v20, 0.0  ;;  %v756_v20 = vld [vmem:[%s1419_s7 + $0x70] sm:$0xff] }
  0x83   : > { %763 = vmatpush.msra.mxu2 %v756_v20 }
  0x85   : > { %v448_v37 = vpop.permute.xlu2 %447 }
  0x86   : > { %v496_v42 = vmul.f32 %v991_v38, %v448_v37  ;;  %v650_v37 = vld [vmem:[%s1417_s5 + $0x48] sm:$0xff] }
  0x87   : > { %667 = vmatpush.msra.mxu1 %v650_v37  ;;  %v746_v37 = vld [vmem:[%s1419_s7 + $0x20] sm:$0xff] }
  0x88   : > { %v516_v47 = vadd.f32 %v992_v39, %v496_v42  ;;  %v646_v42 = vld [vmem:[%s1417_s5 + $0x28] sm:$0xff] }
  0x8a   : > { %v532_v29 = vmax.f32 %v516_v47, 0.0 }
  0x8c   : > { %v418_v40 = vpop.permute.xlu1 %417  ;;  %v408_v41 = vpop.permute.xlu0 %407 }
  0x8d   : > { %v488_v43 = vmul.f32 %v991_v38, %v408_v41  ;;  %v463_v44 = vpop.permute.xlu2 %462  ;;  %v490_v54 = vmul.f32 %v991_v38, %v418_v40  ;;  %v648_v40 = vld [vmem:[%s1417_s5 + $0x38] sm:$0xff]  ;;  %v647_v41 = vld [vmem:[%s1417_s5 + $0x30] sm:$0xff] }
  0x8e   : > { %v499_v46 = vmul.f32 %v991_v38, %v463_v44  ;;  %v645_v44 = vld [vmem:[%s1417_s5 + $0x20] sm:$0xff] }
  0x8f   : > { %v508_v45 = vadd.f32 %v992_v39, %v488_v43  ;;  %v510_v59 = vadd.f32 %v992_v39, %v490_v54 }
  0x90   : > { %v1248_v49 = vadd.f32 %v992_v39, %v499_v46  ;;  %v643_v46 = vld [vmem:[%s1417_s5 + $0x10] sm:$0xff] }
  0x91   : > { %v524_v48 = vmax.f32 %v508_v45, 0.0  ;;  %v526_v62 = vmax.f32 %v510_v59, 0.0  ;;  %v644_v45 = vld [vmem:[%s1417_s5 + $0x18] sm:$0xff] }
  0x92   : > { %v535_v43 = vmax.f32 %v1248_v49, 0.0  ;;  %v641_v49 = vld [vmem:[%s1417_s5] sm:$0xff] }
  0x93   : > { %576 = vmatmul.f32.vlgmr.msra.gmra.mxu0 %v524_v48  ;;  %v642_v48 = vld [vmem:[%s1417_s5 + $0x8] sm:$0xff] }
  0x94   : > { %v423_v50 = vpop.permute.xlu1 %422  ;;  %v413_v51 = vpop.permute.xlu0 %412 }
  0x95   : > { %v489_v52 = vmul.f32 %v991_v38, %v413_v51  ;;  %v478_v53 = vpop.permute.xlu2 %477  ;;  %v491_v63 = vmul.f32 %v991_v38, %v423_v50 }
  0x96   : > { %v502_v56 = vmul.f32 %v991_v38, %v478_v53  ;;  %v1305_v53 = vld [vmem:[%s1416_s4] ss:$0 sm:$0xff] }
  0x97   : > { %v509_v55 = vadd.f32 %v992_v39, %v489_v52  ;;  %v511_v4 = vadd.f32 %v992_v39, %v491_v63 }
  0x98   : > { %v1250_v58 = vadd.f32 %v992_v39, %v502_v56 }
  0x99   : > { %v525_v57 = vmax.f32 %v509_v55, 0.0  ;;  %v527_v8 = vmax.f32 %v511_v4, 0.0 }
  0x9a   : > { %v538_v51 = vmax.f32 %v1250_v58, 0.0 }
  0x9b   : > { %579 = vmatmul.f32.gmra.mxu0 %v525_v57 }
  0x9c   : > { %v443_v60 = vpop.permute.xlu1 %442  ;;  %v438_v61 = vpop.permute.xlu0 %437 }
  0x9d   : > { %v494_v22 = vmul.f32 %v991_v38, %v438_v61  ;;  %v495_v25 = vmul.f32 %v991_v38, %v443_v60 }
  0x9f   : > { %v514_v24 = vadd.f32 %v992_v39, %v494_v22  ;;  %v515_v27 = vadd.f32 %v992_v39, %v495_v25  ;;  %v755_v22 = vld [vmem:[%s1419_s7 + $0x68] sm:$0xff] }
  0xa0   : > { %764 = vmatpush.msra.mxu2 %v755_v22 }
  0xa1   : > { %v530_v26 = vmax.f32 %v514_v24, 0.0  ;;  %v531_v28 = vmax.f32 %v515_v27, 0.0  ;;  %v753_v24 = vld [vmem:[%s1419_s7 + $0x58] sm:$0xff]  ;;  %v752_v27 = vld [vmem:[%s1419_s7 + $0x50] sm:$0xff] }
  0xa3   : > { %582 = vmatmul.f32.gmra.mxu0 %v526_v62 }
  0xa4   : > { %v458_v0 = vpop.permute.xlu1 %457  ;;  %v453_v1 = vpop.permute.xlu0 %452 }
  0xa5   : > { %v498_v2 = vmul.f32 %v991_v38, %v458_v0  ;;  %v497_v3 = vmul.f32 %v991_v38, %v453_v1 }
  0xa7   : > { %v517_v6 = vadd.f32 %v992_v39, %v497_v3  ;;  %v518_v7 = vadd.f32 %v992_v39, %v498_v2 }
  0xa9   : > { %v533_v33 = vmax.f32 %v517_v6, 0.0 }
  0xab   : > { %585 = vmatmul.f32.gmra.mxu0 %v527_v8 }
  0xac   : > { %v473_v10 = vpop.permute.xlu1 %472  ;;  %v468_v11 = vpop.permute.xlu0 %467 }
  0xad   : > { %v501_v12 = vmul.f32 %v991_v38, %v473_v10  ;;  %v500_v13 = vmul.f32 %v991_v38, %v468_v11 }
  0xaf   : > { %v520_v15 = vadd.f32 %v992_v39, %v500_v13  ;;  %v521_v16 = vadd.f32 %v992_v39, %v501_v12 }
  0xb1   : > { %v536_v47 = vmax.f32 %v520_v15, 0.0  ;;  %v537_v50 = vmax.f32 %v521_v16, 0.0 }
  0xb3   : > { %588 = vmatmul.f32.gmra.mxu0 %v528_v14 }
  0xb4   : > { %v483_v18 = vpop.permute.xlu0 %482 }
  0xb5   : > { %v503_v19 = vmul.f32 %v991_v38, %v483_v18  ;;  %v534_v38 = vmax.f32 %v518_v7, 0.0 }
  0xb7   : > { %v523_v21 = vadd.f32 %v992_v39, %v503_v19  ;;  %v649_v39 = vld [vmem:[%s1417_s5 + $0x40] sm:$0xff] }
  0xb8   : > { %668 = vmatpush.msra.mxu1 %v649_v39 }
  0xb9   : > { %v539_v52 = vmax.f32 %v523_v21, 0.0 }
  0xba   : > { %669 = vmatpush.msra.mxu1 %v648_v40 }
  0xbb   : > { %591 = vmatmul.f32.gmra.mxu0 %v529_v23  ;;  %v754_v23 = vld [vmem:[%s1419_s7 + $0x60] sm:$0xff] }
  0xbc   : > { %670 = vmatpush.msra.mxu1 %v647_v41  ;;  %765 = vmatpush.msra.mxu2 %v754_v23  ;;  %v744_v41 = vld [vmem:[%s1419_s7 + $0x10] sm:$0xff] }
  0xbe   : > { %671 = vmatpush.msra.mxu1 %v646_v42  ;;  %766 = vmatpush.msra.mxu2 %v753_v24 }
  0xc0   : > { %672 = vmatpush.msra.mxu1 %v645_v44  ;;  %767 = vmatpush.msra.mxu2 %v752_v27  ;;  %v742_v44 = vld [vmem:[%s1419_s7] sm:$0xff] }
  0xc2   : > { %673 = vmatpush.msra.mxu1 %v644_v45 }
  0xc3   : > { %594 = vmatmul.f32.gmra.mxu0 %v530_v26 }
  0xc4   : > { %674 = vmatpush.msra.mxu1 %v643_v46 }
  0xc6   : > { %675 = vmatpush.msra.mxu1 %v642_v48 }
  0xc8   : > { %676 = vmatpush.msra.mxu1 %v641_v49 }
  0xcb   : > { %597 = vmatmul.f32.gmra.mxu0 %v531_v28 }
  0xd3   : > { %600 = vmatmul.f32.gmra.mxu0 %v532_v29  ;;  %v751_v29 = vld [vmem:[%s1419_s7 + $0x48] sm:$0xff] }
  0xd4   : > { %768 = vmatpush.msra.mxu2 %v751_v29 }
  0xd6   : > { %769 = vmatpush.msra.mxu2 %v750_v30 }
  0xd8   : > { %770 = vmatpush.msra.mxu2 %v749_v31 }
  0xda   : > { %771 = vmatpush.msra.mxu2 %v748_v34 }
  0xdb   : > { %603 = vmatmul.f32.gmra.mxu0 %v533_v33 }
  0xdc   : > { %772 = vmatpush.msra.mxu2 %v747_v36 }
  0xde   : > { %773 = vmatpush.msra.mxu2 %v746_v37 }
  0xe3   : > { %606 = vmatmul.f32.gmra.mxu0 %v534_v38  ;;  %v745_v38 = vld [vmem:[%s1419_s7 + $0x18] sm:$0xff] }
  0xe4   : > { %774 = vmatpush.msra.mxu2 %v745_v38 }
  0xe6   : > { %775 = vmatpush.msra.mxu2 %v744_v41 }
  0xeb   : > { %609 = vmatmul.f32.gmra.mxu0 %v535_v43  ;;  %v743_v43 = vld [vmem:[%s1419_s7 + $0x8] sm:$0xff] }
  0xec   : > { %776 = vmatpush.msra.mxu2 %v743_v43 }
  0xee   : > { %777 = vmatpush.msra.mxu2 %v742_v44 }
  0xf3   : > { %612 = vmatmul.f32.gmra.mxu0 %v536_v47 }
  0xfb   : > { %615 = vmatmul.f32.gmra.mxu0 %v537_v50 }
 0x103   : > { %618 = vmatmul.f32.gmra.mxu0 %v538_v51 }
 0x10b   : > { %621 = vmatmul.f32.gmra.mxu0 %v539_v52 }
 0x110   : > { %v577_v54 = vpop.f32.mrf.mxu0 }
 0x111   : > { %v578_v55 = vadd.f32 %v1305_v53, %v577_v54 }
 0x113   : > { %v625_v56 = vmax.f32 %v578_v55, 0.0  ;;  %v994_v55 = vld [vmem:[%s1418_s6] ss:$0 sm:$0xff] }
 0x115   : > { %677 = vmatmul.f32.vlgmr.msra.gmra.mxu1 %v625_v56 }
 0x118   : > { %v580_v57 = vpop.f32.mrf.mxu0 }
 0x119   : > { %v581_v59 = vadd.f32 %v1305_v53, %v580_v57 }
 0x11b   : > { %v626_v60 = vmax.f32 %v581_v59, 0.0 }
 0x11d   : > { %680 = vmatmul.f32.gmra.mxu1 %v626_v60 }
 0x120   : > { %v583_v61 = vpop.f32.mrf.mxu0 }
 0x121   : > { %v584_v58 = vadd.f32 %v1305_v53, %v583_v61 }
 0x123   : > { %v627_v62 = vmax.f32 %v584_v58, 0.0 }
 0x125   : > { %683 = vmatmul.f32.gmra.mxu1 %v627_v62 }
 0x128   : > { %v586_v63 = vpop.f32.mrf.mxu0 }
 0x129   : > { %v587_v0 = vadd.f32 %v1305_v53, %v586_v63 }
 0x12b   : > { %v628_v1 = vmax.f32 %v587_v0, 0.0 }
 0x12d   : > { %686 = vmatmul.f32.gmra.mxu1 %v628_v1 }
 0x130   : > { %v589_v2 = vpop.f32.mrf.mxu0 }
 0x131   : > { %v590_v3 = vadd.f32 %v1305_v53, %v589_v2 }
 0x133   : > { %v629_v4 = vmax.f32 %v590_v3, 0.0 }
 0x135   : > { %689 = vmatmul.f32.gmra.mxu1 %v629_v4 }
 0x138   : > { %v592_v5 = vpop.f32.mrf.mxu0 }
 0x139   : > { %v593_v6 = vadd.f32 %v1305_v53, %v592_v5 }
 0x13b   : > { %v630_v7 = vmax.f32 %v593_v6, 0.0 }
 0x13d   : > { %692 = vmatmul.f32.gmra.mxu1 %v630_v7 }
 0x140   : > { %v595_v8 = vpop.f32.mrf.mxu0 }
 0x141   : > { %v596_v9 = vadd.f32 %v1305_v53, %v595_v8 }
 0x143   : > { %v631_v10 = vmax.f32 %v596_v9, 0.0 }
 0x145   : > { %695 = vmatmul.f32.gmra.mxu1 %v631_v10 }
 0x148   : > { %v598_v11 = vpop.f32.mrf.mxu0 }
 0x149   : > { %v599_v12 = vadd.f32 %v1305_v53, %v598_v11 }
 0x14b   : > { %v632_v13 = vmax.f32 %v599_v12, 0.0 }
 0x14d   : > { %698 = vmatmul.f32.gmra.mxu1 %v632_v13 }
 0x150   : > { %v601_v14 = vpop.f32.mrf.mxu0 }
 0x151   : > { %v602_v15 = vadd.f32 %v1305_v53, %v601_v14 }
 0x153   : > { %v633_v16 = vmax.f32 %v602_v15, 0.0 }
 0x155   : > { %701 = vmatmul.f32.gmra.mxu1 %v633_v16 }
 0x158   : > { %v604_v18 = vpop.f32.mrf.mxu0 }
 0x159   : > { %v605_v19 = vadd.f32 %v1305_v53, %v604_v18 }
 0x15b   : > { %v634_v21 = vmax.f32 %v605_v19, 0.0 }
 0x15d   : > { %704 = vmatmul.f32.gmra.mxu1 %v634_v21 }
 0x160   : > { %v607_v25 = vpop.f32.mrf.mxu0 }
 0x161   : > { %v608_v26 = vadd.f32 %v1305_v53, %v607_v25 }
 0x163   : > { %v635_v28 = vmax.f32 %v608_v26, 0.0 }
 0x165   : > { %707 = vmatmul.f32.gmra.mxu1 %v635_v28 }
 0x168   : > { %v610_v32 = vpop.f32.mrf.mxu0 }
 0x169   : > { %v611_v33 = vadd.f32 %v1305_v53, %v610_v32 }
 0x16b   : > { %v636_v35 = vmax.f32 %v611_v33, 0.0 }
 0x16d   : > { %710 = vmatmul.f32.gmra.mxu1 %v636_v35 }
 0x170   : > { %v613_v39 = vpop.f32.mrf.mxu0 }
 0x171   : > { %v614_v40 = vadd.f32 %v1305_v53, %v613_v39 }
 0x173   : > { %v637_v42 = vmax.f32 %v614_v40, 0.0 }
 0x175   : > { %713 = vmatmul.f32.gmra.mxu1 %v637_v42 }
 0x178   : > { %v616_v45 = vpop.f32.mrf.mxu0 }
 0x179   : > { %v617_v46 = vadd.f32 %v1305_v53, %v616_v45 }
 0x17b   : > { %v638_v47 = vmax.f32 %v617_v46, 0.0 }
 0x17d   : > { %716 = vmatmul.f32.gmra.mxu1 %v638_v47 }
 0x180   : > { %v619_v48 = vpop.f32.mrf.mxu0 }
 0x181   : > { %v620_v49 = vadd.f32 %v1305_v53, %v619_v48 }
 0x183   : > { %v639_v50 = vmax.f32 %v620_v49, 0.0 }
 0x185   : > { %719 = vmatmul.f32.gmra.mxu1 %v639_v50 }
 0x188   : > { %v622_v51 = vpop.f32.mrf.mxu0 }
 0x189   : > { %v623_v52 = vadd.f32 %v1305_v53, %v622_v51 }
 0x18b   : > { %v640_v54 = vmax.f32 %v623_v52, 0.0 }
 0x18d   : > { %722 = vmatmul.f32.gmra.mxu1 %v640_v54 }
 0x192   : > { %v678_v56 = vpop.f32.mrf.mxu1 }
 0x193   : > { %v679_v57 = vadd.f32 %v994_v55, %v678_v56 }
 0x195   : > { %v726_v59 = vmax.f32 %v679_v57, 0.0 }
 0x197   : > { %778 = vmatmul.f32.vlgmr.msra.gmra.mxu2 %v726_v59 }
 0x19a   : > { %v681_v60 = vpop.f32.mrf.mxu1 }
 0x19b   : > { %v682_v61 = vadd.f32 %v994_v55, %v681_v60 }
 0x19d   : > { %v727_v58 = vmax.f32 %v682_v61, 0.0 }
 0x19f   : > { %781 = vmatmul.f32.gmra.mxu2 %v727_v58 }
 0x1a2   : > { %v684_v62 = vpop.f32.mrf.mxu1 }
 0x1a3   : > { %v685_v63 = vadd.f32 %v994_v55, %v684_v62 }
 0x1a5   : > { %v728_v0 = vmax.f32 %v685_v63, 0.0 }
 0x1a7   : > { %784 = vmatmul.f32.gmra.mxu2 %v728_v0 }
 0x1aa   : > { %v687_v1 = vpop.f32.mrf.mxu1 }
 0x1ab   : > { %v688_v53 = vadd.f32 %v994_v55, %v687_v1 }
 0x1ad   : > { %v729_v2 = vmax.f32 %v688_v53, 0.0 }
 0x1af   : > { %787 = vmatmul.f32.gmra.mxu2 %v729_v2 }
 0x1b2   : > { %v690_v3 = vpop.f32.mrf.mxu1 }
 0x1b3   : > { %v691_v4 = vadd.f32 %v994_v55, %v690_v3 }
 0x1b5   : > { %v730_v5 = vmax.f32 %v691_v4, 0.0 }
 0x1b7   : > { %790 = vmatmul.f32.gmra.mxu2 %v730_v5 }
 0x1ba   : > { %v693_v6 = vpop.f32.mrf.mxu1 }
 0x1bb   : > { %v694_v7 = vadd.f32 %v994_v55, %v693_v6 }
 0x1bd   : > { %v731_v8 = vmax.f32 %v694_v7, 0.0 }
 0x1bf   : > { %793 = vmatmul.f32.gmra.mxu2 %v731_v8 }
 0x1c2   : > { %v696_v9 = vpop.f32.mrf.mxu1 }
 0x1c3   : > { %v697_v10 = vadd.f32 %v994_v55, %v696_v9 }
 0x1c5   : > { %v732_v11 = vmax.f32 %v697_v10, 0.0 }
 0x1c7   : > { %796 = vmatmul.f32.gmra.mxu2 %v732_v11 }
 0x1ca   : > { %v699_v12 = vpop.f32.mrf.mxu1 }
 0x1cb   : > { %v700_v13 = vadd.f32 %v994_v55, %v699_v12 }
 0x1cd   : > { %v733_v14 = vmax.f32 %v700_v13, 0.0 }
 0x1cf   : > { %799 = vmatmul.f32.gmra.mxu2 %v733_v14 }
 0x1d2   : > { %v702_v15 = vpop.f32.mrf.mxu1 }
 0x1d3   : > { %v703_v16 = vadd.f32 %v994_v55, %v702_v15 }
 0x1d5   : > { %v734_v17 = vmax.f32 %v703_v16, 0.0 }
 0x1d7   : > { %802 = vmatmul.f32.gmra.mxu2 %v734_v17 }
 0x1da   : > { %v705_v18 = vpop.f32.mrf.mxu1 }
 0x1db   : > { %v706_v19 = vadd.f32 %v994_v55, %v705_v18 }
 0x1dd   : > { %v735_v20 = vmax.f32 %v706_v19, 0.0 }
 0x1df   : > { %805 = vmatmul.f32.gmra.mxu2 %v735_v20 }
 0x1e2   : > { %v708_v21 = vpop.f32.mrf.mxu1 }
 0x1e3   : > { %v709_v22 = vadd.f32 %v994_v55, %v708_v21 }
 0x1e5   : > { %v736_v23 = vmax.f32 %v709_v22, 0.0 }
 0x1e7   : > { %808 = vmatmul.f32.gmra.mxu2 %v736_v23 }
 0x1ea   : > { %v711_v24 = vpop.f32.mrf.mxu1 }
 0x1eb   : > { %v712_v25 = vadd.f32 %v994_v55, %v711_v24  ;;  %v843_v24 = vld [vmem:[%s1421_s9] sm:$0x1] }
 0x1ed   : > { %v737_v26 = vmax.f32 %v712_v25, 0.0  ;;  %v848_v25 = vpop.permute.xlu1 %847 }
 0x1ef   : > { %811 = vmatmul.f32.gmra.mxu2 %v737_v26  ;;  %v850_v26 = vperm.slane %v848_v25, 0 }
 0x1f2   : > { %v714_v27 = vpop.f32.mrf.mxu1 }
 0x1f3   : > { %v715_v28 = vadd.f32 %v994_v55, %v714_v27 }
 0x1f5   : > { %v738_v29 = vmax.f32 %v715_v28, 0.0 }
 0x1f7   : > { %814 = vmatmul.f32.gmra.mxu2 %v738_v29 }
 0x1fa   : > { %v717_v30 = vpop.f32.mrf.mxu1 }
 0x1fb   : > { %v718_v31 = vadd.f32 %v994_v55, %v717_v30 }
 0x1fd   : > { %v739_v32 = vmax.f32 %v718_v31, 0.0 }
 0x1ff   : > { %817 = vmatmul.f32.gmra.mxu2 %v739_v32 }
 0x202   : > { %v720_v33 = vpop.f32.mrf.mxu1 }
 0x203   : > { %v721_v34 = vadd.f32 %v994_v55, %v720_v33 }
 0x205   : > { %v740_v35 = vmax.f32 %v721_v34, 0.0 }
 0x207   : > { %820 = vmatmul.f32.gmra.mxu2 %v740_v35 }
 0x20a   : > { %v723_v36 = vpop.f32.mrf.mxu1 }
 0x20b   : > { %v724_v37 = vadd.f32 %v994_v55, %v723_v36  ;;  %v995_v55 = vld [vmem:[%s1420_s8] ss:$0 sm:$0xff] }
 0x20d   : > { %v741_v38 = vmax.f32 %v724_v37, 0.0 }
 0x20f   : > { %823 = vmatmul.f32.gmra.mxu2 %v741_v38 }
 0x21a   : > { %v779_v39 = vpop.f32.mrf.mxu2 }
 0x21b   : > { %v780_v21 = vadd.f32 %v995_v55, %v779_v39 }
 0x21d   : > { %v827_v23 = vmax.f32 %v780_v21, 0.0 }
 0x222   : > { %v782_v40 = vpop.f32.mrf.mxu2 }
 0x223   : > { %v783_v19 = vadd.f32 %v995_v55, %v782_v40 }
 0x225   : > { %v828_v22 = vmax.f32 %v783_v19, 0.0 }
 0x22a   : > { %v785_v41 = vpop.f32.mrf.mxu2 }
 0x22b   : > { %v786_v17 = vadd.f32 %v995_v55, %v785_v41 }
 0x22d   : > { %v829_v20 = vmax.f32 %v786_v17, 0.0 }
 0x232   : > { %v788_v42 = vpop.f32.mrf.mxu2 }
 0x233   : > { %v789_v15 = vadd.f32 %v995_v55, %v788_v42 }
 0x235   : > { %v830_v18 = vmax.f32 %v789_v15, 0.0 }
 0x23a   : > { %v791_v43 = vpop.f32.mrf.mxu2 }
 0x23b   : > { %v792_v13 = vadd.f32 %v995_v55, %v791_v43 }
 0x23d   : > { %v831_v16 = vmax.f32 %v792_v13, 0.0 }
 0x242   : > { %v794_v44 = vpop.f32.mrf.mxu2 }
 0x243   : > { %v795_v11 = vadd.f32 %v995_v55, %v794_v44 }
 0x245   : > { %v832_v14 = vmax.f32 %v795_v11, 0.0 }
 0x24a   : > { %v797_v45 = vpop.f32.mrf.mxu2 }
 0x24b   : > { %v798_v9 = vadd.f32 %v995_v55, %v797_v45 }
 0x24d   : > { %v833_v12 = vmax.f32 %v798_v9, 0.0 }
 0x252   : > { %v800_v46 = vpop.f32.mrf.mxu2 }
 0x253   : > { %v801_v7 = vadd.f32 %v995_v55, %v800_v46 }
 0x255   : > { %v834_v10 = vmax.f32 %v801_v7, 0.0 }
 0x25a   : > { %v803_v47 = vpop.f32.mrf.mxu2 }
 0x25b   : > { %v804_v5 = vadd.f32 %v995_v55, %v803_v47 }
 0x25d   : > { %v835_v8 = vmax.f32 %v804_v5, 0.0 }
 0x262   : > { %v806_v48 = vpop.f32.mrf.mxu2 }
 0x263   : > { %v807_v3 = vadd.f32 %v995_v55, %v806_v48 }
 0x265   : > { %v836_v6 = vmax.f32 %v807_v3, 0.0 }
 0x26a   : > { %v809_v49 = vpop.f32.mrf.mxu2 }
 0x26b   : > { %v810_v53 = vadd.f32 %v995_v55, %v809_v49 }
 0x26d   : > { %v837_v4 = vmax.f32 %v810_v53, 0.0 }
 0x272   : > { %v812_v50 = vpop.f32.mrf.mxu2 }
 0x273   : > { %v813_v0 = vadd.f32 %v995_v55, %v812_v50 }
 0x275   : > { %v838_v2 = vmax.f32 %v813_v0, 0.0 }
 0x27a   : > { %v815_v51 = vpop.f32.mrf.mxu2 }
 0x27b   : > { %v816_v62 = vadd.f32 %v995_v55, %v815_v51 }
 0x27d   : > { %v839_v1 = vmax.f32 %v816_v62, 0.0 }
 0x282   : > { %v818_v52 = vpop.f32.mrf.mxu2 }
 0x283   : > { %v819_v61 = vadd.f32 %v995_v55, %v818_v52 }
 0x285   : > { %v840_v63 = vmax.f32 %v819_v61, 0.0 }
 0x28a   : > { %v821_v54 = vpop.f32.mrf.mxu2 }
 0x28b   : > { %v822_v59 = vadd.f32 %v995_v55, %v821_v54 }
 0x28d   : > { %v841_v58 = vmax.f32 %v822_v59, 0.0 }
 0x292   : > { %v824_v56 = vpop.f32.mrf.mxu2 }
 0x293   : > { %v825_v57 = vadd.f32 %v995_v55, %v824_v56 }
 0x295   : > { %v842_v60 = vmax.f32 %v825_v57, 0.0 }
 0x297   : > { %851 = vmatpush.xpose.msra.mxu3 %v842_v60 }
 0x29b   : > { %852 = vmatpush.xpose.msra.mxu3 %v841_v58 }
 0x29f   : > { %853 = vmatpush.xpose.msra.mxu3 %v840_v63 }
 0x2a3   : > { %854 = vmatpush.xpose.msra.mxu3 %v839_v1 }
 0x2a7   : > { %855 = vmatpush.xpose.msra.mxu3 %v838_v2 }
 0x2ab   : > { %856 = vmatpush.xpose.msra.mxu3 %v837_v4 }
 0x2af   : > { %857 = vmatpush.xpose.msra.mxu3 %v836_v6 }
 0x2b3   : > { %858 = vmatpush.xpose.msra.mxu3 %v835_v8 }
 0x2b7   : > { %859 = vmatpush.xpose.msra.mxu3 %v834_v10 }
 0x2bb   : > { %860 = vmatpush.xpose.msra.mxu3 %v833_v12 }
 0x2bf   : > { %861 = vmatpush.xpose.msra.mxu3 %v832_v14 }
 0x2c3   : > { %862 = vmatpush.xpose.msra.mxu3 %v831_v16 }
 0x2c7   : > { %863 = vmatpush.xpose.msra.mxu3 %v830_v18 }
 0x2cb   : > { %864 = vmatpush.xpose.msra.mxu3 %v829_v20 }
 0x2cf   : > { %865 = vmatpush.xpose.msra.mxu3 %v828_v22 }
 0x2d3   : > { %866 = vmatpush.xpose.msra.mxu3 %v827_v23 }
 0x2d6   : > { %867 = vmatmul.f32.vlgmr.msra.gmra.mxu3 %v843_v24 }
 0x359   : > { %v868_v27 = vpop.f32.mrf.mxu3 }
 0x35a   : > { %v869_v28 = vadd.f32 %v868_v27, %v850_v26 }
 0x35c   : > { %871 = vst [vmem:[%s381_s25] sm:$0x1] %v869_v28 }
 0x35d   : > { %1023 = shalt.err (!%p1020_p3)
}
 0x35e   : > { %948 = dma.vmem_to_hbm [thread:$0]  (%p1162_p5), %s884_s26, 16, %s886_s30, %s873_s12  }
 0x35f PF: > { %p954_p4 = scmp.ge.s32.totalorder %s1058_s22, 2  ;;  %s897_s17 = sand.u32 1, %s1046_s19  }
 0x360   : > { %s898_s25 = scalar_lea.sflag [#allocation4], %s897_s17 }
 0x361   : > { %p951_p7 = pnand %p954_p4, %p1166_p6 }
 0x363   : > { %p952_p8 = pneg %p951_p7 }
 0x365   : > { %1041 = dma.done.wait (%p952_p8), %s898_s25, 16  }
 0x366   : > { %1043 = vsyncadd (%p952_p8), %s898_s25, 4294967280  ;;  %p23_p9 = scmp.ge.s32.totalorder %s1149_s24, 5   ;;  %s1426_s19 = smov %s1050_s20 }
 0x367   : > { %s1427_s20 = smov %s1054_s21  ;;  %s1428_s21 = smov %s1160_s27 }
 0x368   : > { %s1429_s22 = smov %s1149_s24  ;;  %25 = sbr.rel (!%p23_p9) target bundleno = 6 (0x6), region = 99 }
 0x36d   :  { %903 = vsyncpa [#allocation4], 1 }
 0x36e   :  { %905 = vsyncpa [#allocation4 + $0x1], 1 }

</bundles_post_ra>
